<compile_context>
chip_gen: v6e
topology: v6e:2x2x1
jax: 0.10.0
libtpu: 0.0.40
codegen_flags: <defaults>
</compile_context>

<pallas_src>
import functools

import jax
import jax.numpy as jnp
from jax.experimental import pallas as pl
from jax.experimental.pallas import tpu as pltpu

# Smallest *normal* f32 (PyTorch's 1e-40 is a subnormal → flushed to 0 on TPU).
_CLAMP = float(jnp.finfo(jnp.float32).tiny)
_LANE = 128
_SUBLANE = 8


def _round_up(x, m):
    return ((x + m - 1) // m) * m


def _ensemble_kernel(x_ref, w_ref, b_ref, o_ref, *, n_models):
    """One batch tile: per-model (TB,H)@(H,C) matmul -> softmax -> mean -> clamp -> log."""
    x = x_ref[...]                                    # (TB, H), loaded once
    acc = None
    for n in range(n_models):                         # static, small; full-lane slabs
        lg = jnp.dot(x, w_ref[n], preferred_element_type=jnp.float32) + b_ref[n]
        mx = jnp.max(lg, axis=-1, keepdims=True)
        e = jnp.exp(lg - mx)
        denom = jnp.sum(e, axis=-1, keepdims=True)
        r = pl.reciprocal(denom, approx=True)         # EUP vrcp, own VLIW slot
        r = r * (2.0 - denom * r)                     # one Newton step -> ~f32 accuracy
        p = e * r
        acc = p if acc is None else acc + p
    avg = acc * jnp.float32(1.0 / n_models)
    avg = jnp.maximum(avg, jnp.float32(_CLAMP))
    o_ref[...] = jnp.log(avg).astype(o_ref.dtype)


def _single_model_kernel(x_ref, w_ref, b_ref, o_ref):
    """len(models) == 1 path: raw model output (no softmax / log)."""
    o_ref[...] = (jnp.dot(x_ref[...], w_ref[0], preferred_element_type=jnp.float32)
                  + b_ref[0]).astype(o_ref.dtype)


def _pick_batch_tile(B):
    # Cap at 256 (vreg pressure), guarantee >=2 grid steps for B >= 256 (v7x megacore).
    if B >= 512:
        return 256
    if B >= 256:
        return 128
    return _round_up(max(B, _SUBLANE), _SUBLANE)      # small batch: one full-extent tile


def _vmem_limit_bytes():
    try:
        cap = pltpu.get_tpu_info().vmem_capacity_bytes
    except Exception:
        return None                                   # let the compiler use its default
    return int(cap * 0.85)                            # ~54 MiB v7x, ~108 MiB v5e/v6e


def ensemble_forward(x, W, b):
    """x: (B, H) f32; W: (N, H, C) f32; b: (N, 1, C) f32  ->  (B, C) f32."""
    n_models, H, C = W.shape
    B = x.shape[0]
    TB = _pick_batch_tile(B)
    B_pad = _round_up(B, TB)
    C_pad = _round_up(C, _LANE)

    # Lane-align classes / sublane-align batch; padding is a no-op when already aligned.
    if C_pad != C:
        W = jnp.pad(W, ((0, 0), (0, 0), (0, C_pad - C)))
        # Padded class columns must not perturb the softmax denominator.
        pad_val = -1e30 if n_models > 1 else 0.0
        b = jnp.pad(b, ((0, 0), (0, 0), (0, C_pad - C)), constant_values=pad_val)
    if B_pad != B:
        x = jnp.pad(x, ((0, B_pad - B), (0, 0)))

    if n_models == 1:
        kernel = _single_model_kernel
    else:
        kernel = functools.partial(_ensemble_kernel, n_models=n_models)

    out_shape = jax.ShapeDtypeStruct((B_pad, C_pad), jnp.float32)
    grid = (B_pad // TB,)
    compiler_params = pltpu.CompilerParams(
        dimension_semantics=("parallel",),            # batch tiles are independent
        vmem_limit_bytes=_vmem_limit_bytes(),
    )

    def _run(single_buffer_weights):
        if single_buffer_weights:
            # Constant index_map -> fetched once; no need to double-buffer.
            w_spec = pl.BlockSpec((n_models, H, C_pad), lambda i: (0, 0, 0),
                                  pipeline_mode=pl.Buffered(1))
            b_spec = pl.BlockSpec((n_models, 1, C_pad), lambda i: (0, 0, 0),
                                  pipeline_mode=pl.Buffered(1))
        else:
            w_spec = pl.BlockSpec((n_models, H, C_pad), lambda i: (0, 0, 0))
            b_spec = pl.BlockSpec((n_models, 1, C_pad), lambda i: (0, 0, 0))
        out = pl.pallas_call(
            kernel,
            out_shape=out_shape,
            grid_spec=pltpu.PrefetchScalarGridSpec(
                num_scalar_prefetch=0,
                grid=grid,
                in_specs=[
                    pl.BlockSpec((TB, H), lambda i: (i, 0)),   # x: tiled over batch
                    w_spec,                                    # weights: resident
                    b_spec,                                    # bias: resident
                ],
                out_specs=pl.BlockSpec((TB, C_pad), lambda i: (i, 0)),
            ),
            compiler_params=compiler_params,
        )(x, W, b)
        return jax.block_until_ready(out)

    try:
        out = _run(True)
    except Exception:
        # Older JAX without BlockSpec.pipeline_mode / Buffered(1): default double-buffer.
        out = _run(False)

    if B_pad != B or C_pad != C:
        out = out[:B, :C]
    return out


def _reference(x, W, b):
    logits = jnp.einsum('bh,nhc->nbc', x, W) + b          # (N, B, C)
    probs = jax.nn.softmax(logits, axis=-1)
    avg = jnp.mean(probs, axis=0)
    return jnp.log(jnp.maximum(avg, 1e-40))


if __name__ == "__main__":
    key = jax.random.PRNGKey(0)
    n_models, batch, hidden, n_classes = 3, 8, 32, 128

    k1, k2, k3 = jax.random.split(key, 3)
    x = jax.random.normal(k1, (batch, hidden), dtype=jnp.float32)
    W = jax.random.normal(k2, (n_models, hidden, n_classes), dtype=jnp.float32) * 0.1
    b = jax.random.normal(k3, (n_models, 1, n_classes), dtype=jnp.float32) * 0.1

    # Ensemble (N > 1) path.
    out = jax.block_until_ready(ensemble_forward(x, W, b))
    ref = _reference(x, W, b)
    assert out.shape == (batch, n_classes)
    assert jnp.allclose(out, ref, atol=1e-4, rtol=1e-4), "ensemble mismatch vs reference"

    # Single-model (N == 1) path: raw logits, matching the PyTorch else-branch.
    out1 = jax.block_until_ready(ensemble_forward(x, W[:1], b[:1]))
    ref1 = x @ W[0] + b[0]
    assert jnp.allclose(out1, ref1, atol=1e-4, rtol=1e-4), "single-model mismatch"

    # Ragged shapes (batch=5, classes=100): exercises the padding / slicing path.
    kr1, kr2, kr3 = jax.random.split(jax.random.PRNGKey(1), 3)
    xr = jax.random.normal(kr1, (5, hidden), dtype=jnp.float32)
    Wr = jax.random.normal(kr2, (2, hidden, 100), dtype=jnp.float32) * 0.1
    br = jax.random.normal(kr3, (2, 1, 100), dtype=jnp.float32) * 0.1
    outr = jax.block_until_ready(ensemble_forward(xr, Wr, br))
    refr = _reference(xr, Wr, br)
    assert outr.shape == (5, 100)
    assert jnp.allclose(outr, refr, atol=1e-4, rtol=1e-4), "ragged mismatch vs reference"

    print("KERNEL_OK")
</pallas_src>

<mosaic_0001>
module attributes {stable_mosaic.version = 11 : i64} {
  func.func @_ensemble_kernel(%arg0: i32, %arg1: memref<8x32xf32, #tpu.memory_space<vmem>>, %arg2: memref<3x32x128xf32, #tpu.memory_space<vmem>>, %arg3: memref<3x1x128xf32, #tpu.memory_space<vmem>>, %arg4: memref<8x128xf32, #tpu.memory_space<vmem>>) attributes {dimension_semantics = [#tpu.dimension_semantics<parallel>], iteration_bounds = array<i64: 1>, scalar_prefetch = 0 : i64, scratch_operands = 0 : i64, tpu.core_type = #tpu.core_type<tc>, window_params = [{transform_indices = @transform_0, window_bounds = array<i64: 8, 32>}, {pipeline_mode = #tpu.pipeline_mode<synchronous>, transform_indices = @transform_1, window_bounds = array<i64: 3, 32, 128>}, {pipeline_mode = #tpu.pipeline_mode<synchronous>, transform_indices = @transform_2, window_bounds = array<i64: 3, 1, 128>}, {transform_indices = @transform_3, window_bounds = array<i64: 8, 128>}]} {
    %c0 = arith.constant 0 : index
    %c0_0 = arith.constant 0 : index
    %0 = vector.load %arg1[%c0, %c0_0] : memref<8x32xf32, #tpu.memory_space<vmem>>, vector<8x32xf32>
    %c0_1 = arith.constant 0 : index
    %c0_2 = arith.constant 0 : index
    %c0_3 = arith.constant 0 : index
    %1 = vector.load %arg2[%c0_1, %c0_2, %c0_3] : memref<3x32x128xf32, #tpu.memory_space<vmem>>, vector<1x32x128xf32>
    %2 = vector.shape_cast %1 : vector<1x32x128xf32> to vector<32x128xf32>
    %cst = arith.constant dense<0.000000e+00> : vector<8x128xf32>
    %3 = tpu.matmul %0, %2, %cst {dimension_numbers = #tpu.dot_dimension_numbers<[1], [0], [0], [1], [0, 0, 1, 1], [], []>} : vector<8x32xf32>, vector<32x128xf32>, vector<8x128xf32> -> vector<8x128xf32>
    %c0_4 = arith.constant 0 : index
    %c0_5 = arith.constant 0 : index
    %c0_6 = arith.constant 0 : index
    %4 = vector.load %arg3[%c0_4, %c0_5, %c0_6] : memref<3x1x128xf32, #tpu.memory_space<vmem>>, vector<1x1x128xf32>
    %5 = vector.shape_cast %4 : vector<1x1x128xf32> to vector<1x128xf32>
    %6 = vector.broadcast %5 : vector<1x128xf32> to vector<8x128xf32>
    %7 = arith.addf %3, %6 : vector<8x128xf32>
    %cst_7 = arith.constant dense<0xFF800000> : vector<8xf32>
    %8 = vector.multi_reduction <maximumf>, %7, %cst_7 [1] : vector<8x128xf32> to vector<8xf32>
    %9 = vector.shape_cast %8 : vector<8xf32> to vector<8x1xf32>
    %10 = vector.broadcast %9 : vector<8x1xf32> to vector<8x128xf32>
    %11 = arith.subf %7, %10 : vector<8x128xf32>
    %12 = math.exp %11 : vector<8x128xf32>
    %cst_8 = arith.constant dense<0.000000e+00> : vector<8xf32>
    %13 = vector.multi_reduction <add>, %12, %cst_8 [1] : vector<8x128xf32> to vector<8xf32>
    %14 = vector.shape_cast %13 : vector<8xf32> to vector<8x1xf32>
    %15 = tpu.reciprocal %14 {approx = true} : vector<8x1xf32> -> vector<8x1xf32>
    %16 = arith.mulf %14, %15 : vector<8x1xf32>
    %cst_9 = arith.constant 2.000000e+00 : f32
    %17 = vector.broadcast %cst_9 : f32 to vector<8x1xf32>
    %18 = arith.subf %17, %16 : vector<8x1xf32>
    %19 = arith.mulf %15, %18 : vector<8x1xf32>
    %20 = vector.broadcast %19 : vector<8x1xf32> to vector<8x128xf32>
    %21 = arith.mulf %12, %20 : vector<8x128xf32>
    %c1 = arith.constant 1 : index
    %c0_10 = arith.constant 0 : index
    %c0_11 = arith.constant 0 : index
    %22 = vector.load %arg2[%c1, %c0_10, %c0_11] : memref<3x32x128xf32, #tpu.memory_space<vmem>>, vector<1x32x128xf32>
    %23 = vector.shape_cast %22 : vector<1x32x128xf32> to vector<32x128xf32>
    %cst_12 = arith.constant dense<0.000000e+00> : vector<8x128xf32>
    %24 = tpu.matmul %0, %23, %cst_12 {dimension_numbers = #tpu.dot_dimension_numbers<[1], [0], [0], [1], [0, 0, 1, 1], [], []>} : vector<8x32xf32>, vector<32x128xf32>, vector<8x128xf32> -> vector<8x128xf32>
    %c1_13 = arith.constant 1 : index
    %c0_14 = arith.constant 0 : index
    %c0_15 = arith.constant 0 : index
    %25 = vector.load %arg3[%c1_13, %c0_14, %c0_15] : memref<3x1x128xf32, #tpu.memory_space<vmem>>, vector<1x1x128xf32>
    %26 = vector.shape_cast %25 : vector<1x1x128xf32> to vector<1x128xf32>
    %27 = vector.broadcast %26 : vector<1x128xf32> to vector<8x128xf32>
    %28 = arith.addf %24, %27 : vector<8x128xf32>
    %cst_16 = arith.constant dense<0xFF800000> : vector<8xf32>
    %29 = vector.multi_reduction <maximumf>, %28, %cst_16 [1] : vector<8x128xf32> to vector<8xf32>
    %30 = vector.shape_cast %29 : vector<8xf32> to vector<8x1xf32>
    %31 = vector.broadcast %30 : vector<8x1xf32> to vector<8x128xf32>
    %32 = arith.subf %28, %31 : vector<8x128xf32>
    %33 = math.exp %32 : vector<8x128xf32>
    %cst_17 = arith.constant dense<0.000000e+00> : vector<8xf32>
    %34 = vector.multi_reduction <add>, %33, %cst_17 [1] : vector<8x128xf32> to vector<8xf32>
    %35 = vector.shape_cast %34 : vector<8xf32> to vector<8x1xf32>
    %36 = tpu.reciprocal %35 {approx = true} : vector<8x1xf32> -> vector<8x1xf32>
    %37 = arith.mulf %35, %36 : vector<8x1xf32>
    %cst_18 = arith.constant 2.000000e+00 : f32
    %38 = vector.broadcast %cst_18 : f32 to vector<8x1xf32>
    %39 = arith.subf %38, %37 : vector<8x1xf32>
    %40 = arith.mulf %36, %39 : vector<8x1xf32>
    %41 = vector.broadcast %40 : vector<8x1xf32> to vector<8x128xf32>
    %42 = arith.mulf %33, %41 : vector<8x128xf32>
    %43 = arith.addf %21, %42 : vector<8x128xf32>
    %c2 = arith.constant 2 : index
    %c0_19 = arith.constant 0 : index
    %c0_20 = arith.constant 0 : index
    %44 = vector.load %arg2[%c2, %c0_19, %c0_20] : memref<3x32x128xf32, #tpu.memory_space<vmem>>, vector<1x32x128xf32>
    %45 = vector.shape_cast %44 : vector<1x32x128xf32> to vector<32x128xf32>
    %cst_21 = arith.constant dense<0.000000e+00> : vector<8x128xf32>
    %46 = tpu.matmul %0, %45, %cst_21 {dimension_numbers = #tpu.dot_dimension_numbers<[1], [0], [0], [1], [0, 0, 1, 1], [], []>} : vector<8x32xf32>, vector<32x128xf32>, vector<8x128xf32> -> vector<8x128xf32>
    %c2_22 = arith.constant 2 : index
    %c0_23 = arith.constant 0 : index
    %c0_24 = arith.constant 0 : index
    %47 = vector.load %arg3[%c2_22, %c0_23, %c0_24] : memref<3x1x128xf32, #tpu.memory_space<vmem>>, vector<1x1x128xf32>
    %48 = vector.shape_cast %47 : vector<1x1x128xf32> to vector<1x128xf32>
    %49 = vector.broadcast %48 : vector<1x128xf32> to vector<8x128xf32>
    %50 = arith.addf %46, %49 : vector<8x128xf32>
    %cst_25 = arith.constant dense<0xFF800000> : vector<8xf32>
    %51 = vector.multi_reduction <maximumf>, %50, %cst_25 [1] : vector<8x128xf32> to vector<8xf32>
    %52 = vector.shape_cast %51 : vector<8xf32> to vector<8x1xf32>
    %53 = vector.broadcast %52 : vector<8x1xf32> to vector<8x128xf32>
    %54 = arith.subf %50, %53 : vector<8x128xf32>
    %55 = math.exp %54 : vector<8x128xf32>
    %cst_26 = arith.constant dense<0.000000e+00> : vector<8xf32>
    %56 = vector.multi_reduction <add>, %55, %cst_26 [1] : vector<8x128xf32> to vector<8xf32>
    %57 = vector.shape_cast %56 : vector<8xf32> to vector<8x1xf32>
    %58 = tpu.reciprocal %57 {approx = true} : vector<8x1xf32> -> vector<8x1xf32>
    %59 = arith.mulf %57, %58 : vector<8x1xf32>
    %cst_27 = arith.constant 2.000000e+00 : f32
    %60 = vector.broadcast %cst_27 : f32 to vector<8x1xf32>
    %61 = arith.subf %60, %59 : vector<8x1xf32>
    %62 = arith.mulf %58, %61 : vector<8x1xf32>
    %63 = vector.broadcast %62 : vector<8x1xf32> to vector<8x128xf32>
    %64 = arith.mulf %55, %63 : vector<8x128xf32>
    %65 = arith.addf %43, %64 : vector<8x128xf32>
    %cst_28 = arith.constant 0.333333343 : f32
    %66 = vector.broadcast %cst_28 : f32 to vector<8x128xf32>
    %67 = arith.mulf %65, %66 : vector<8x128xf32>
    %cst_29 = arith.constant 1.17549435E-38 : f32
    %68 = vector.broadcast %cst_29 : f32 to vector<8x128xf32>
    %69 = arith.maximumf %67, %68 : vector<8x128xf32>
    %70 = math.log %69 : vector<8x128xf32>
    %c0_30 = arith.constant 0 : index
    %c0_31 = arith.constant 0 : index
    %71 = vector.load %arg4[%c0_30, %c0_31] : memref<8x128xf32, #tpu.memory_space<vmem>>, vector<8x128xf32>
    tpu.vector_store %arg4[%c0_30, %c0_31], %70 {strides = array<i32>} : memref<8x128xf32, #tpu.memory_space<vmem>>, vector<8x128xf32>,
    return
  }
  func.func @transform_0(%arg0: i32) -> (i32, i32) {
    %c0_i32 = arith.constant 0 : i32
    %c0_i32_0 = arith.constant 0 : i32
    return %arg0, %c0_i32 : i32, i32
  }
  func.func @transform_1(%arg0: i32) -> (i32, i32, i32) {
    %c0_i32 = arith.constant 0 : i32
    %c0_i32_0 = arith.constant 0 : i32
    %c0_i32_1 = arith.constant 0 : i32
    %c0_i32_2 = arith.constant 0 : i32
    return %c0_i32, %c0_i32_0, %c0_i32_1 : i32, i32, i32
  }
  func.func @transform_2(%arg0: i32) -> (i32, i32, i32) {
    %c0_i32 = arith.constant 0 : i32
    %c0_i32_0 = arith.constant 0 : i32
    %c0_i32_1 = arith.constant 0 : i32
    %c0_i32_2 = arith.constant 0 : i32
    return %c0_i32, %c0_i32_0, %c0_i32_1 : i32, i32, i32
  }
  func.func @transform_3(%arg0: i32) -> (i32, i32) {
    %c0_i32 = arith.constant 0 : i32
    %c0_i32_0 = arith.constant 0 : i32
    return %arg0, %c0_i32 : i32, i32
  }
}

module attributes {stable_mosaic.version = 11 : i64} {
  func.func @_ensemble_kernel(%arg0: i32, %arg1: memref<8x32xf32, #tpu.memory_space<vmem>>, %arg2: memref<3x32x128xf32, #tpu.memory_space<vmem>>, %arg3: memref<3x1x128xf32, #tpu.memory_space<vmem>>, %arg4: memref<8x128xf32, #tpu.memory_space<vmem>>) attributes {dimension_semantics = [#tpu.dimension_semantics<parallel>], iteration_bounds = array<i64: 1>, scalar_prefetch = 0 : i64, scratch_operands = 0 : i64, tpu.core_type = #tpu.core_type<tc>, window_params = [{transform_indices = @transform_0, window_bounds = array<i64: 8, 32>}, {pipeline_mode = #tpu.pipeline_mode<synchronous>, transform_indices = @transform_1, window_bounds = array<i64: 3, 32, 128>}, {pipeline_mode = #tpu.pipeline_mode<synchronous>, transform_indices = @transform_2, window_bounds = array<i64: 3, 1, 128>}, {transform_indices = @transform_3, window_bounds = array<i64: 8, 128>}]} {
    %c0 = arith.constant 0 : index
    %c0_0 = arith.constant 0 : index
    %0 = vector.load %arg1[%c0, %c0_0] : memref<8x32xf32, #tpu.memory_space<vmem>>, vector<8x32xf32>
    %c0_1 = arith.constant 0 : index
    %c0_2 = arith.constant 0 : index
    %c0_3 = arith.constant 0 : index
    %1 = vector.load %arg2[%c0_1, %c0_2, %c0_3] : memref<3x32x128xf32, #tpu.memory_space<vmem>>, vector<1x32x128xf32>
    %2 = vector.shape_cast %1 : vector<1x32x128xf32> to vector<32x128xf32>
    %cst = arith.constant dense<0.000000e+00> : vector<8x128xf32>
    %3 = tpu.matmul %0, %2, %cst {dimension_numbers = #tpu.dot_dimension_numbers<[1], [0], [0], [1], [0, 0, 1, 1], [], []>} : vector<8x32xf32>, vector<32x128xf32>, vector<8x128xf32> -> vector<8x128xf32>
    %c0_4 = arith.constant 0 : index
    %c0_5 = arith.constant 0 : index
    %c0_6 = arith.constant 0 : index
    %4 = vector.load %arg3[%c0_4, %c0_5, %c0_6] : memref<3x1x128xf32, #tpu.memory_space<vmem>>, vector<1x1x128xf32>
    %5 = vector.shape_cast %4 : vector<1x1x128xf32> to vector<1x128xf32>
    %6 = vector.broadcast %5 : vector<1x128xf32> to vector<8x128xf32>
    %7 = arith.addf %3, %6 : vector<8x128xf32>
    %cst_7 = arith.constant dense<0xFF800000> : vector<8xf32>
    %8 = vector.multi_reduction <maximumf>, %7, %cst_7 [1] : vector<8x128xf32> to vector<8xf32>
    %9 = vector.shape_cast %8 : vector<8xf32> to vector<8x1xf32>
    %10 = vector.broadcast %9 : vector<8x1xf32> to vector<8x128xf32>
    %11 = arith.subf %7, %10 : vector<8x128xf32>
    %12 = math.exp %11 : vector<8x128xf32>
    %cst_8 = arith.constant dense<0.000000e+00> : vector<8xf32>
    %13 = vector.multi_reduction <add>, %12, %cst_8 [1] : vector<8x128xf32> to vector<8xf32>
    %14 = vector.shape_cast %13 : vector<8xf32> to vector<8x1xf32>
    %15 = tpu.reciprocal %14 {approx = true} : vector<8x1xf32> -> vector<8x1xf32>
    %16 = arith.mulf %14, %15 : vector<8x1xf32>
    %cst_9 = arith.constant 2.000000e+00 : f32
    %17 = vector.broadcast %cst_9 : f32 to vector<8x1xf32>
    %18 = arith.subf %17, %16 : vector<8x1xf32>
    %19 = arith.mulf %15, %18 : vector<8x1xf32>
    %20 = vector.broadcast %19 : vector<8x1xf32> to vector<8x128xf32>
    %21 = arith.mulf %12, %20 : vector<8x128xf32>
    %c1 = arith.constant 1 : index
    %c0_10 = arith.constant 0 : index
    %c0_11 = arith.constant 0 : index
    %22 = vector.load %arg2[%c1, %c0_10, %c0_11] : memref<3x32x128xf32, #tpu.memory_space<vmem>>, vector<1x32x128xf32>
    %23 = vector.shape_cast %22 : vector<1x32x128xf32> to vector<32x128xf32>
    %cst_12 = arith.constant dense<0.000000e+00> : vector<8x128xf32>
    %24 = tpu.matmul %0, %23, %cst_12 {dimension_numbers = #tpu.dot_dimension_numbers<[1], [0], [0], [1], [0, 0, 1, 1], [], []>} : vector<8x32xf32>, vector<32x128xf32>, vector<8x128xf32> -> vector<8x128xf32>
    %c1_13 = arith.constant 1 : index
    %c0_14 = arith.constant 0 : index
    %c0_15 = arith.constant 0 : index
    %25 = vector.load %arg3[%c1_13, %c0_14, %c0_15] : memref<3x1x128xf32, #tpu.memory_space<vmem>>, vector<1x1x128xf32>
    %26 = vector.shape_cast %25 : vector<1x1x128xf32> to vector<1x128xf32>
    %27 = vector.broadcast %26 : vector<1x128xf32> to vector<8x128xf32>
    %28 = arith.addf %24, %27 : vector<8x128xf32>
    %cst_16 = arith.constant dense<0xFF800000> : vector<8xf32>
    %29 = vector.multi_reduction <maximumf>, %28, %cst_16 [1] : vector<8x128xf32> to vector<8xf32>
    %30 = vector.shape_cast %29 : vector<8xf32> to vector<8x1xf32>
    %31 = vector.broadcast %30 : vector<8x1xf32> to vector<8x128xf32>
    %32 = arith.subf %28, %31 : vector<8x128xf32>
    %33 = math.exp %32 : vector<8x128xf32>
    %cst_17 = arith.constant dense<0.000000e+00> : vector<8xf32>
    %34 = vector.multi_reduction <add>, %33, %cst_17 [1] : vector<8x128xf32> to vector<8xf32>
    %35 = vector.shape_cast %34 : vector<8xf32> to vector<8x1xf32>
    %36 = tpu.reciprocal %35 {approx = true} : vector<8x1xf32> -> vector<8x1xf32>
    %37 = arith.mulf %35, %36 : vector<8x1xf32>
    %cst_18 = arith.constant 2.000000e+00 : f32
    %38 = vector.broadcast %cst_18 : f32 to vector<8x1xf32>
    %39 = arith.subf %38, %37 : vector<8x1xf32>
    %40 = arith.mulf %36, %39 : vector<8x1xf32>
    %41 = vector.broadcast %40 : vector<8x1xf32> to vector<8x128xf32>
    %42 = arith.mulf %33, %41 : vector<8x128xf32>
    %43 = arith.addf %21, %42 : vector<8x128xf32>
    %c2 = arith.constant 2 : index
    %c0_19 = arith.constant 0 : index
    %c0_20 = arith.constant 0 : index
    %44 = vector.load %arg2[%c2, %c0_19, %c0_20] : memref<3x32x128xf32, #tpu.memory_space<vmem>>, vector<1x32x128xf32>
    %45 = vector.shape_cast %44 : vector<1x32x128xf32> to vector<32x128xf32>
    %cst_21 = arith.constant dense<0.000000e+00> : vector<8x128xf32>
    %46 = tpu.matmul %0, %45, %cst_21 {dimension_numbers = #tpu.dot_dimension_numbers<[1], [0], [0], [1], [0, 0, 1, 1], [], []>} : vector<8x32xf32>, vector<32x128xf32>, vector<8x128xf32> -> vector<8x128xf32>
    %c2_22 = arith.constant 2 : index
    %c0_23 = arith.constant 0 : index
    %c0_24 = arith.constant 0 : index
    %47 = vector.load %arg3[%c2_22, %c0_23, %c0_24] : memref<3x1x128xf32, #tpu.memory_space<vmem>>, vector<1x1x128xf32>
    %48 = vector.shape_cast %47 : vector<1x1x128xf32> to vector<1x128xf32>
    %49 = vector.broadcast %48 : vector<1x128xf32> to vector<8x128xf32>
    %50 = arith.addf %46, %49 : vector<8x128xf32>
    %cst_25 = arith.constant dense<0xFF800000> : vector<8xf32>
    %51 = vector.multi_reduction <maximumf>, %50, %cst_25 [1] : vector<8x128xf32> to vector<8xf32>
    %52 = vector.shape_cast %51 : vector<8xf32> to vector<8x1xf32>
    %53 = vector.broadcast %52 : vector<8x1xf32> to vector<8x128xf32>
    %54 = arith.subf %50, %53 : vector<8x128xf32>
    %55 = math.exp %54 : vector<8x128xf32>
    %cst_26 = arith.constant dense<0.000000e+00> : vector<8xf32>
    %56 = vector.multi_reduction <add>, %55, %cst_26 [1] : vector<8x128xf32> to vector<8xf32>
    %57 = vector.shape_cast %56 : vector<8xf32> to vector<8x1xf32>
    %58 = tpu.reciprocal %57 {approx = true} : vector<8x1xf32> -> vector<8x1xf32>
    %59 = arith.mulf %57, %58 : vector<8x1xf32>
    %cst_27 = arith.constant 2.000000e+00 : f32
    %60 = vector.broadcast %cst_27 : f32 to vector<8x1xf32>
    %61 = arith.subf %60, %59 : vector<8x1xf32>
    %62 = arith.mulf %58, %61 : vector<8x1xf32>
    %63 = vector.broadcast %62 : vector<8x1xf32> to vector<8x128xf32>
    %64 = arith.mulf %55, %63 : vector<8x128xf32>
    %65 = arith.addf %43, %64 : vector<8x128xf32>
    %cst_28 = arith.constant 0.333333343 : f32
    %66 = vector.broadcast %cst_28 : f32 to vector<8x128xf32>
    %67 = arith.mulf %65, %66 : vector<8x128xf32>
    %cst_29 = arith.constant 1.17549435E-38 : f32
    %68 = vector.broadcast %cst_29 : f32 to vector<8x128xf32>
    %69 = arith.maximumf %67, %68 : vector<8x128xf32>
    %70 = math.log %69 : vector<8x128xf32>
    %c0_30 = arith.constant 0 : index
    %c0_31 = arith.constant 0 : index
    %71 = vector.load %arg4[%c0_30, %c0_31] : memref<8x128xf32, #tpu.memory_space<vmem>>, vector<8x128xf32>
    tpu.vector_store %arg4[%c0_30, %c0_31], %70 {strides = array<i32>} : memref<8x128xf32, #tpu.memory_space<vmem>>, vector<8x128xf32>,
    return
  }
  func.func @transform_0(%arg0: i32) -> (i32, i32) {
    %c0_i32 = arith.constant 0 : i32
    %c0_i32_0 = arith.constant 0 : i32
    return %arg0, %c0_i32 : i32, i32
  }
  func.func @transform_1(%arg0: i32) -> (i32, i32, i32) {
    %c0_i32 = arith.constant 0 : i32
    %c0_i32_0 = arith.constant 0 : i32
    %c0_i32_1 = arith.constant 0 : i32
    %c0_i32_2 = arith.constant 0 : i32
    return %c0_i32, %c0_i32_0, %c0_i32_1 : i32, i32, i32
  }
  func.func @transform_2(%arg0: i32) -> (i32, i32, i32) {
    %c0_i32 = arith.constant 0 : i32
    %c0_i32_0 = arith.constant 0 : i32
    %c0_i32_1 = arith.constant 0 : i32
    %c0_i32_2 = arith.constant 0 : i32
    return %c0_i32, %c0_i32_0, %c0_i32_1 : i32, i32, i32
  }
  func.func @transform_3(%arg0: i32) -> (i32, i32) {
    %c0_i32 = arith.constant 0 : i32
    %c0_i32_0 = arith.constant 0 : i32
    return %arg0, %c0_i32 : i32, i32
  }
}

</mosaic_0001>

<bundles_post_ra>
// kernel: tpu_custom_call.1
= control target key start
LH: loop header
LB: loop body
LE: loop exit
PB: predicated region body
PF: predicated region fallthrough
CT: control target
= control target key end

     0   :  { %8 = vsyncpa [#allocation3], 0  ;;  %s546_s0 = inlined_call_operand.hbm [shape: f32[8,32], index: 0, kind: input, shape index: {}]   ;;  %s547_s1 = inlined_call_operand.hbm [shape: f32[3,32,128], index: 1, kind: input, shape index: {}]   ;;  %s548_s2 = inlined_call_operand.vmem [shape: f32[3,1,128], index: 2, kind: input, shape index: {}]   ;;  %s549_s3 = inlined_call_operand.hbm [shape: f32[8,128], index: 3, kind: output, shape index: {}]  }
   0x1   :  { %9 = vsyncpa [#allocation6], 0 }
   0x2   :  { %10 = vsyncpa [#allocation4], 0  ;;  %s495_s12 = smov [#allocation2]   ;;  %s496_s14 = smov [#allocation5]  }
   0x3   :  { %s17_s13 = sshll.u32 %s495_s12, 4  ;;  %s26_s15 = sshll.u32 %s496_s14, 4  ;;  %s18_s13 = int_to_ptr.vmem [resolvable:$true] %s17_s13  ;;  %s27_s15 = int_to_ptr.vmem [resolvable:$true] %s26_s15 }
   0x4   :  { %s437_s16 = scalar_lea.vmem %s18_s13, 128  ;;  %p442_p1 = scmp.lt.s32.totalorder %s18_s13, %s18_s13 }
   0x5   :  { %p438_p0 = scmp.ne.s32.totalorder %s18_s13, %s437_s16  ;;  %p443_p2 = scmp.lt.s32.totalorder %s437_s16, %s437_s16 }
   0x7   :  { %p444_p3 = por %p443_p2, %p442_p1 }
   0x9   :  { %p445_p4 = pnand %p444_p3, %p438_p0 }
   0xb   :  { %448 = shalt.err (!%p445_p4)
}
   0xc   :  { %20 = dma.hbm_to_vmem [thread:$0]  %s546_s0, 128, %s18_s13, [#allocation3]  }
   0xd   :  { %s457_s19 = scalar_lea.vmem %s27_s15, 1536  ;;  %p462_p6 = scmp.lt.s32.totalorder %s27_s15, %s27_s15 }
   0xe   :  { %p458_p5 = scmp.ne.s32.totalorder %s27_s15, %s457_s19  ;;  %p463_p7 = scmp.lt.s32.totalorder %s457_s19, %s457_s19 }
  0x10   :  { %p464_p8 = por %p463_p7, %p462_p6 }
  0x12   :  { %p465_p9 = pnand %p464_p8, %p458_p5 }
  0x14   :  { %468 = shalt.err (!%p465_p9)
}
  0x15   :  { %s497_s20 = smov 128   ;;  %s498_s21 = smov 8  }
  0x16   :  { %32 = dma.hbm_to_vmem [thread:$0]  %s547_s1, 1536, %s27_s15, [#allocation6], %s497_s20, %s497_s20, %s498_s21  }
  0x17   :  { %489 = dma.done.wait [#allocation3], 128  }
  0x18   :  { %490 = vsyncadd [#allocation3], 4294967168 }
  0x19   :  { %491 = dma.done.wait [#allocation6], 1536  }
  0x1a   :  { %492 = vsyncadd [#allocation6], 4294965760  ;;  %v499_v0 = vmov 0.0   ;;  %vm500_vm0 = vmmov 0   ;;  %v45_v1 = vld [vmem:[#allocation5 + $0x18] sm:$0xff]  ;;  %v44_v2 = vld [vmem:[#allocation5 + $0x10] sm:$0xff] }
  0x1b   :  { %375 = vmatprep.subr.mxu0 %v499_v0  ;;  %386 = vmatprep.subr.mxu1 %v499_v0  ;;  %v143_v3 = vld [vmem:[#allocation5 + $0x38] sm:$0xff]  ;;  %v142_v4 = vld [vmem:[#allocation5 + $0x30] sm:$0xff]  ;;  %v43_v5 = vld [vmem:[#allocation5 + $0x8] sm:$0xff]  ;;  %vm53_vm1 = vcmask 261120  }
  0x1c   :  { %383 = vmatprep.mubr.msk.f32.mxu0 %vm500_vm0, %v499_v0  ;;  %394 = vmatprep.mubr.msk.f32.mxu1 %vm500_vm0, %v499_v0  ;;  %v141_v6 = vld [vmem:[#allocation5 + $0x28] sm:$0xff]  ;;  %v42_v7 = vld [vmem:[#allocation5] sm:$0xff]  ;;  %v41_v8 = vld [vmem:[#allocation2] sm:$0xff] }
  0x1d   :  { %376 = vmatpush3.msra.mxu0 %v45_v1  ;;  %387 = vmatpush3.msra.mxu1 %v143_v3  ;;  %v239_v9 = vld [vmem:[#allocation5 + $0x58] sm:$0xff]  ;;  %v140_v10 = vld [vmem:[#allocation5 + $0x20] sm:$0xff]  ;;  %v238_v11 = vld [vmem:[#allocation5 + $0x50] sm:$0xff] }
  0x1e   :  { %377 = vmatprep.subr.mxu0 %v499_v0  ;;  %388 = vmatprep.subr.mxu1 %v499_v0  ;;  %v237_v12 = vld [vmem:[#allocation5 + $0x48] sm:$0xff]  ;;  %v236_v13 = vld [vmem:[#allocation5 + $0x40] sm:$0xff]  ;;  %v352_v14 = vld [vmem:[%s548_s2] ss:$0 sm:$0xff] }
  0x1f   :  { %378 = vmatpush3.msra.mxu0 %v44_v2  ;;  %389 = vmatpush3.msra.mxu1 %v142_v4  ;;  %v355_v16 = vld [vmem:[%s548_s2 + $0x1] ss:$0 sm:$0xff]  ;;  %v358_v22 = vld [vmem:[%s548_s2 + $0x2] ss:$0 sm:$0xff]  ;;  %s501_s2 = smov [#allocation7]  }
  0x20   :  { %379 = vmatprep.subr.mxu0 %v499_v0  ;;  %390 = vmatprep.subr.mxu1 %v499_v0  ;;  %s342_s28 = sshll.u32 %s501_s2, 4  ;;  %s343_s28 = int_to_ptr.vmem [resolvable:$true] %s342_s28 }
  0x21   :  { %380 = vmatpush3.msra.mxu0 %v43_v5  ;;  %391 = vmatpush3.msra.mxu1 %v141_v6  ;;  %s469_s29 = scalar_lea.vmem %s343_s28, 128  ;;  %p474_p11 = scmp.lt.s32.totalorder %s343_s28, %s343_s28 }
  0x22   :  { %381 = vmatprep.subr.mxu0 %v499_v0  ;;  %392 = vmatprep.subr.mxu1 %v499_v0  ;;  %p470_p10 = scmp.ne.s32.totalorder %s343_s28, %s469_s29  ;;  %p475_p12 = scmp.lt.s32.totalorder %s469_s29, %s469_s29 }
  0x23   :  { %382 = vmatpush3.msra.mxu0 %v42_v7  ;;  %393 = vmatpush3.msra.mxu1 %v140_v10 }
  0x24   :  { %384 = vmatmul.mubr.msk.f32.vlgmr.msra.gmra.mxu0 %vm53_vm1, %v41_v8  ;;  %397 = vmatprep.subr.mxu0 %v499_v0  ;;  %p476_p13 = por %p475_p12, %p474_p11 }
  0x25   :  { %398 = vmatpush3.msra.mxu0 %v239_v9  ;;  %395 = vmatmul.mubr.msk.f32.vlgmr.msra.gmra.mxu1 %vm53_vm1, %v41_v8 }
  0x26   :  { %399 = vmatprep.subr.mxu0 %v499_v0  ;;  %405 = vmatprep.mubr.msk.f32.mxu0 %vm500_vm0, %v499_v0  ;;  %p477_p0 = pnand %p476_p13, %p470_p10 }
  0x27   :  { %400 = vmatpush3.msra.mxu0 %v238_v11 }
  0x28   :  { %401 = vmatprep.subr.mxu0 %v499_v0 }
  0x29   :  { %402 = vmatpush3.msra.mxu0 %v237_v12 }
  0x2a   :  { %403 = vmatprep.subr.mxu0 %v499_v0 }
  0x2b   :  { %404 = vmatpush3.msra.mxu0 %v236_v13 }
  0x2c   :  { %406 = vmatmul.mubr.msk.f32.vlgmr.msra.gmra.mxu0 %vm53_vm1, %v41_v8 }
  0xe4   :  { %v123_v15 = vpop.f32.mrf.mxu0 }
  0xe5   :  { %v124_v17 = vadd.f32 %v352_v14, %v123_v15  ;;  %v218_v19 = vpop.f32.mrf.mxu1 }
  0xe6   :  { %v385_v18 = vpop.f32.mrf.mxu0  ;;  %v219_v20 = vadd.f32 %v355_v16, %v218_v19 }
  0xe7   :  { %127 = vmax.xlane.f32.xlu0 %v124_v17  ;;  %v396_v21 = vpop.f32.mrf.mxu1 }
  0xeb   :  { %222 = vmax.xlane.f32.xlu0 %v219_v20 }
  0xec   :  { %v314_v23 = vpop.f32.mrf.mxu0 }
  0xed   :  { %v315_v24 = vadd.f32 %v358_v22, %v314_v23 }
  0xee   :  { %v407_v25 = vpop.f32.mrf.mxu0 }
  0xef   :  { %318 = vmax.xlane.f32.xlu1 %v315_v24 }
 0x170   :  { %v128_v26 = vpop.xlane.xlu0 %127 }
 0x171   :  { %v129_v27 = vsub.f32 %v124_v17, %v128_v26 }
 0x173   :  { %v130_v28 = vmul.f32 1.442695, %v129_v27 }
 0x174   :  { %v223_v29 = vpop.xlane.xlu0 %222 }
 0x175   :  { %415 = vpow2.f32 %v130_v28  ;;  %v224_v30 = vsub.f32 %v219_v20, %v223_v29 }
 0x177   :  { %v225_v31 = vmul.f32 1.442695, %v224_v30 }
 0x178   :  { %v319_v32 = vpop.xlane.xlu1 %318 }
 0x179   :  { %417 = vpow2.f32 %v225_v31  ;;  %v320_v33 = vsub.f32 %v315_v24, %v319_v32 }
 0x17b   :  { %v321_v34 = vmul.f32 1.442695, %v320_v33 }
 0x17d   :  { %419 = vpow2.f32 %v321_v34 }
 0x182   :  { %v416_v35 = vpop.eup %415 }
 0x183   :  { %132 = vadd.xlane.f32.xlu1 %v416_v35 }
 0x186   :  { %v418_v36 = vpop.eup %417 }
 0x187   :  { %227 = vadd.xlane.f32.xlu0 %v418_v36 }
 0x18a   :  { %v420_v37 = vpop.eup %419 }
 0x18b   :  { %323 = vadd.xlane.f32.xlu1 %v420_v37 }
 0x20c   :  { %v133_v38 = vpop.xlane.xlu1 %132 }
 0x20d   :  { %421 = vrcp.f32 %v133_v38 }
 0x210   :  { %v228_v39 = vpop.xlane.xlu0 %227 }
 0x211   :  { %423 = vrcp.f32 %v228_v39 }
 0x214   :  { %v324_v40 = vpop.xlane.xlu1 %323 }
 0x215   :  { %425 = vrcp.f32 %v324_v40 }
 0x21a   :  { %v422_v41 = vpop.eup %421 }
 0x21b   :  { %v135_v42 = vmul.f32 %v422_v41, %v133_v38 }
 0x21d   :  { %v136_v44 = vsub.f32 2.0, %v135_v42 }
 0x21e   :  { %v424_v43 = vpop.eup %423 }
 0x21f   :  { %v230_v45 = vmul.f32 %v424_v43, %v228_v39  ;;  %v137_v48 = vmul.f32 %v422_v41, %v136_v44 }
 0x221   :  { %v231_v46 = vsub.f32 2.0, %v230_v45  ;;  %v138_v53 = vmul.f32 %v416_v35, %v137_v48 }
 0x222   :  { %v426_v47 = vpop.eup %425 }
 0x223   :  { %v232_v49 = vmul.f32 %v424_v43, %v231_v46  ;;  %v326_v50 = vmul.f32 %v426_v47, %v324_v40 }
 0x225   :  { %v233_v51 = vmul.f32 %v418_v36, %v232_v49  ;;  %v327_v52 = vsub.f32 2.0, %v326_v50 }
 0x227   :  { %v328_v54 = vmul.f32 %v426_v47, %v327_v52  ;;  %v234_v55 = vadd.f32 %v233_v51, %v138_v53 }
 0x229   :  { %v329_v56 = vmul.f32 %v420_v37, %v328_v54 }
 0x22b   :  { %v330_v57 = vadd.f32 %v329_v56, %v234_v55 }
 0x22d   :  { %v331_v58 = vmul.f32 0.33333334, %v330_v57 }
 0x22f   :  { %v332_v59 = vmax.f32 %v331_v58, 1.1754944e-38 }
 0x231   :  { %427 = vlog2.f32 %v332_v59 }
 0x23e   :  { %v428_v60 = vpop.eup %427 }
 0x23f   :  { %v334_v61 = vmul.f32 0.6931472, %v428_v60 }
 0x241   :  { %335 = vst [vmem:[#allocation7] sm:$0xff] %v334_v61 }
 0x242   :  { %480 = shalt.err (!%p477_p0)
}
 0x243   :  { %345 = dma.vmem_to_hbm [thread:$0]  %s343_s28, 128, %s549_s3, [#allocation4]  }
 0x244   :  { %493 = dma.done.wait [#allocation4], 128  }
 0x245   :  { %494 = vsyncadd [#allocation4], 4294967168 }
 0x246   :  { %349 = vsyncpa [#allocation3], 1 }
 0x247   :  { %350 = vsyncpa [#allocation6], 1 }
 0x248   :  { %351 = vsyncpa [#allocation4], 1 }

// kernel: tpu_custom_call.1
= control target key start
LH: loop header
LB: loop body
LE: loop exit
PB: predicated region body
PF: predicated region fallthrough
CT: control target
= control target key end

     0   :  { %8 = vsyncpa [#allocation3], 0  ;;  %s546_s0 = inlined_call_operand.hbm [shape: f32[8,32], index: 0, kind: input, shape index: {}]   ;;  %s547_s1 = inlined_call_operand.hbm [shape: f32[3,32,128], index: 1, kind: input, shape index: {}]   ;;  %s548_s2 = inlined_call_operand.vmem [shape: f32[3,1,128], index: 2, kind: input, shape index: {}]   ;;  %s549_s3 = inlined_call_operand.hbm [shape: f32[8,128], index: 3, kind: output, shape index: {}]  }
   0x1   :  { %9 = vsyncpa [#allocation6], 0 }
   0x2   :  { %10 = vsyncpa [#allocation4], 0  ;;  %s495_s12 = smov [#allocation2]   ;;  %s496_s14 = smov [#allocation5]  }
   0x3   :  { %s17_s13 = sshll.u32 %s495_s12, 4  ;;  %s26_s15 = sshll.u32 %s496_s14, 4  ;;  %s18_s13 = int_to_ptr.vmem [resolvable:$true] %s17_s13  ;;  %s27_s15 = int_to_ptr.vmem [resolvable:$true] %s26_s15 }
   0x4   :  { %s437_s16 = scalar_lea.vmem %s18_s13, 128  ;;  %p442_p1 = scmp.lt.s32.totalorder %s18_s13, %s18_s13 }
   0x5   :  { %p438_p0 = scmp.ne.s32.totalorder %s18_s13, %s437_s16  ;;  %p443_p2 = scmp.lt.s32.totalorder %s437_s16, %s437_s16 }
   0x7   :  { %p444_p3 = por %p443_p2, %p442_p1 }
   0x9   :  { %p445_p4 = pnand %p444_p3, %p438_p0 }
   0xb   :  { %448 = shalt.err (!%p445_p4)
}
   0xc   :  { %20 = dma.hbm_to_vmem [thread:$0]  %s546_s0, 128, %s18_s13, [#allocation3]  }
   0xd   :  { %s457_s19 = scalar_lea.vmem %s27_s15, 1536  ;;  %p462_p6 = scmp.lt.s32.totalorder %s27_s15, %s27_s15 }
   0xe   :  { %p458_p5 = scmp.ne.s32.totalorder %s27_s15, %s457_s19  ;;  %p463_p7 = scmp.lt.s32.totalorder %s457_s19, %s457_s19 }
  0x10   :  { %p464_p8 = por %p463_p7, %p462_p6 }
  0x12   :  { %p465_p9 = pnand %p464_p8, %p458_p5 }
  0x14   :  { %468 = shalt.err (!%p465_p9)
}
  0x15   :  { %s497_s20 = smov 128   ;;  %s498_s21 = smov 8  }
  0x16   :  { %32 = dma.hbm_to_vmem [thread:$0]  %s547_s1, 1536, %s27_s15, [#allocation6], %s497_s20, %s497_s20, %s498_s21  }
  0x17   :  { %489 = dma.done.wait [#allocation3], 128  }
  0x18   :  { %490 = vsyncadd [#allocation3], 4294967168 }
  0x19   :  { %491 = dma.done.wait [#allocation6], 1536  }
  0x1a   :  { %492 = vsyncadd [#allocation6], 4294965760  ;;  %v499_v0 = vmov 0.0   ;;  %vm500_vm0 = vmmov 0   ;;  %v45_v1 = vld [vmem:[#allocation5 + $0x18] sm:$0xff]  ;;  %v44_v2 = vld [vmem:[#allocation5 + $0x10] sm:$0xff] }
  0x1b   :  { %375 = vmatprep.subr.mxu0 %v499_v0  ;;  %386 = vmatprep.subr.mxu1 %v499_v0  ;;  %v143_v3 = vld [vmem:[#allocation5 + $0x38] sm:$0xff]  ;;  %v142_v4 = vld [vmem:[#allocation5 + $0x30] sm:$0xff]  ;;  %v43_v5 = vld [vmem:[#allocation5 + $0x8] sm:$0xff]  ;;  %vm53_vm1 = vcmask 261120  }
  0x1c   :  { %383 = vmatprep.mubr.msk.f32.mxu0 %vm500_vm0, %v499_v0  ;;  %394 = vmatprep.mubr.msk.f32.mxu1 %vm500_vm0, %v499_v0  ;;  %v141_v6 = vld [vmem:[#allocation5 + $0x28] sm:$0xff]  ;;  %v42_v7 = vld [vmem:[#allocation5] sm:$0xff]  ;;  %v41_v8 = vld [vmem:[#allocation2] sm:$0xff] }
  0x1d   :  { %376 = vmatpush3.msra.mxu0 %v45_v1  ;;  %387 = vmatpush3.msra.mxu1 %v143_v3  ;;  %v239_v9 = vld [vmem:[#allocation5 + $0x58] sm:$0xff]  ;;  %v140_v10 = vld [vmem:[#allocation5 + $0x20] sm:$0xff]  ;;  %v238_v11 = vld [vmem:[#allocation5 + $0x50] sm:$0xff] }
  0x1e   :  { %377 = vmatprep.subr.mxu0 %v499_v0  ;;  %388 = vmatprep.subr.mxu1 %v499_v0  ;;  %v237_v12 = vld [vmem:[#allocation5 + $0x48] sm:$0xff]  ;;  %v236_v13 = vld [vmem:[#allocation5 + $0x40] sm:$0xff]  ;;  %v352_v14 = vld [vmem:[%s548_s2] ss:$0 sm:$0xff] }
  0x1f   :  { %378 = vmatpush3.msra.mxu0 %v44_v2  ;;  %389 = vmatpush3.msra.mxu1 %v142_v4  ;;  %v355_v16 = vld [vmem:[%s548_s2 + $0x1] ss:$0 sm:$0xff]  ;;  %v358_v22 = vld [vmem:[%s548_s2 + $0x2] ss:$0 sm:$0xff]  ;;  %s501_s2 = smov [#allocation7]  }
  0x20   :  { %379 = vmatprep.subr.mxu0 %v499_v0  ;;  %390 = vmatprep.subr.mxu1 %v499_v0  ;;  %s342_s28 = sshll.u32 %s501_s2, 4  ;;  %s343_s28 = int_to_ptr.vmem [resolvable:$true] %s342_s28 }
  0x21   :  { %380 = vmatpush3.msra.mxu0 %v43_v5  ;;  %391 = vmatpush3.msra.mxu1 %v141_v6  ;;  %s469_s29 = scalar_lea.vmem %s343_s28, 128  ;;  %p474_p11 = scmp.lt.s32.totalorder %s343_s28, %s343_s28 }
  0x22   :  { %381 = vmatprep.subr.mxu0 %v499_v0  ;;  %392 = vmatprep.subr.mxu1 %v499_v0  ;;  %p470_p10 = scmp.ne.s32.totalorder %s343_s28, %s469_s29  ;;  %p475_p12 = scmp.lt.s32.totalorder %s469_s29, %s469_s29 }
  0x23   :  { %382 = vmatpush3.msra.mxu0 %v42_v7  ;;  %393 = vmatpush3.msra.mxu1 %v140_v10 }
  0x24   :  { %384 = vmatmul.mubr.msk.f32.vlgmr.msra.gmra.mxu0 %vm53_vm1, %v41_v8  ;;  %397 = vmatprep.subr.mxu0 %v499_v0  ;;  %p476_p13 = por %p475_p12, %p474_p11 }
  0x25   :  { %398 = vmatpush3.msra.mxu0 %v239_v9  ;;  %395 = vmatmul.mubr.msk.f32.vlgmr.msra.gmra.mxu1 %vm53_vm1, %v41_v8 }
  0x26   :  { %399 = vmatprep.subr.mxu0 %v499_v0  ;;  %405 = vmatprep.mubr.msk.f32.mxu0 %vm500_vm0, %v499_v0  ;;  %p477_p0 = pnand %p476_p13, %p470_p10 }
  0x27   :  { %400 = vmatpush3.msra.mxu0 %v238_v11 }
  0x28   :  { %401 = vmatprep.subr.mxu0 %v499_v0 }
  0x29   :  { %402 = vmatpush3.msra.mxu0 %v237_v12 }
  0x2a   :  { %403 = vmatprep.subr.mxu0 %v499_v0 }
  0x2b   :  { %404 = vmatpush3.msra.mxu0 %v236_v13 }
  0x2c   :  { %406 = vmatmul.mubr.msk.f32.vlgmr.msra.gmra.mxu0 %vm53_vm1, %v41_v8 }
  0xe4   :  { %v123_v15 = vpop.f32.mrf.mxu0 }
  0xe5   :  { %v124_v17 = vadd.f32 %v352_v14, %v123_v15  ;;  %v218_v19 = vpop.f32.mrf.mxu1 }
  0xe6   :  { %v385_v18 = vpop.f32.mrf.mxu0  ;;  %v219_v20 = vadd.f32 %v355_v16, %v218_v19 }
  0xe7   :  { %127 = vmax.xlane.f32.xlu0 %v124_v17  ;;  %v396_v21 = vpop.f32.mrf.mxu1 }
  0xeb   :  { %222 = vmax.xlane.f32.xlu0 %v219_v20 }
  0xec   :  { %v314_v23 = vpop.f32.mrf.mxu0 }
  0xed   :  { %v315_v24 = vadd.f32 %v358_v22, %v314_v23 }
  0xee   :  { %v407_v25 = vpop.f32.mrf.mxu0 }
  0xef   :  { %318 = vmax.xlane.f32.xlu1 %v315_v24 }
 0x170   :  { %v128_v26 = vpop.xlane.xlu0 %127 }
 0x171   :  { %v129_v27 = vsub.f32 %v124_v17, %v128_v26 }
 0x173   :  { %v130_v28 = vmul.f32 1.442695, %v129_v27 }
 0x174   :  { %v223_v29 = vpop.xlane.xlu0 %222 }
 0x175   :  { %415 = vpow2.f32 %v130_v28  ;;  %v224_v30 = vsub.f32 %v219_v20, %v223_v29 }
 0x177   :  { %v225_v31 = vmul.f32 1.442695, %v224_v30 }
 0x178   :  { %v319_v32 = vpop.xlane.xlu1 %318 }
 0x179   :  { %417 = vpow2.f32 %v225_v31  ;;  %v320_v33 = vsub.f32 %v315_v24, %v319_v32 }
 0x17b   :  { %v321_v34 = vmul.f32 1.442695, %v320_v33 }
 0x17d   :  { %419 = vpow2.f32 %v321_v34 }
 0x182   :  { %v416_v35 = vpop.eup %415 }
 0x183   :  { %132 = vadd.xlane.f32.xlu1 %v416_v35 }
 0x186   :  { %v418_v36 = vpop.eup %417 }
 0x187   :  { %227 = vadd.xlane.f32.xlu0 %v418_v36 }
 0x18a   :  { %v420_v37 = vpop.eup %419 }
 0x18b   :  { %323 = vadd.xlane.f32.xlu1 %v420_v37 }
 0x20c   :  { %v133_v38 = vpop.xlane.xlu1 %132 }
 0x20d   :  { %421 = vrcp.f32 %v133_v38 }
 0x210   :  { %v228_v39 = vpop.xlane.xlu0 %227 }
 0x211   :  { %423 = vrcp.f32 %v228_v39 }
 0x214   :  { %v324_v40 = vpop.xlane.xlu1 %323 }
 0x215   :  { %425 = vrcp.f32 %v324_v40 }
 0x21a   :  { %v422_v41 = vpop.eup %421 }
 0x21b   :  { %v135_v42 = vmul.f32 %v422_v41, %v133_v38 }
 0x21d   :  { %v136_v44 = vsub.f32 2.0, %v135_v42 }
 0x21e   :  { %v424_v43 = vpop.eup %423 }
 0x21f   :  { %v230_v45 = vmul.f32 %v424_v43, %v228_v39  ;;  %v137_v48 = vmul.f32 %v422_v41, %v136_v44 }
 0x221   :  { %v231_v46 = vsub.f32 2.0, %v230_v45  ;;  %v138_v53 = vmul.f32 %v416_v35, %v137_v48 }
 0x222   :  { %v426_v47 = vpop.eup %425 }
 0x223   :  { %v232_v49 = vmul.f32 %v424_v43, %v231_v46  ;;  %v326_v50 = vmul.f32 %v426_v47, %v324_v40 }
 0x225   :  { %v233_v51 = vmul.f32 %v418_v36, %v232_v49  ;;  %v327_v52 = vsub.f32 2.0, %v326_v50 }
 0x227   :  { %v328_v54 = vmul.f32 %v426_v47, %v327_v52  ;;  %v234_v55 = vadd.f32 %v233_v51, %v138_v53 }
 0x229   :  { %v329_v56 = vmul.f32 %v420_v37, %v328_v54 }
 0x22b   :  { %v330_v57 = vadd.f32 %v329_v56, %v234_v55 }
 0x22d   :  { %v331_v58 = vmul.f32 0.33333334, %v330_v57 }
 0x22f   :  { %v332_v59 = vmax.f32 %v331_v58, 1.1754944e-38 }
 0x231   :  { %427 = vlog2.f32 %v332_v59 }
 0x23e   :  { %v428_v60 = vpop.eup %427 }
 0x23f   :  { %v334_v61 = vmul.f32 0.6931472, %v428_v60 }
 0x241   :  { %335 = vst [vmem:[#allocation7] sm:$0xff] %v334_v61 }
 0x242   :  { %480 = shalt.err (!%p477_p0)
}
 0x243   :  { %345 = dma.vmem_to_hbm [thread:$0]  %s343_s28, 128, %s549_s3, [#allocation4]  }
 0x244   :  { %493 = dma.done.wait [#allocation4], 128  }
 0x245   :  { %494 = vsyncadd [#allocation4], 4294967168 }
 0x246   :  { %349 = vsyncpa [#allocation3], 1 }
 0x247   :  { %350 = vsyncpa [#allocation6], 1 }
 0x248   :  { %351 = vsyncpa [#allocation4], 1 }

</bundles_post_ra>
